<compile_context>
chip_gen: v7x
topology: tpu7x:2x2x1
jax: 0.10.0
libtpu: 0.0.40
codegen_flags: <defaults>
</compile_context>

<pallas_src>
import jax
import jax.numpy as jnp
from jax.experimental import pallas as pl
from jax.experimental.pallas import tpu as pltpu


_VMEM_LIMIT_BYTES = 48 * 1024 * 1024   # safe on v5e/v6e (128 MiB phys) and v7x (64 MiB phys)
_TILE_VMEM_BUDGET = 40 * 1024 * 1024   # headroom inside the limit for compiler scratch


def _projector_kernel(x_ref, w_ref, b_ref, o_ref):
    # x_ref: [TM, H] (input dtype)   w_ref: [H, P] (bf16, pre-transposed)
    # b_ref: [1, P]  (f32)           o_ref: [TM, P] (out dtype)
    x = x_ref[...].astype(jnp.bfloat16)
    acc = jnp.dot(x, w_ref[...], preferred_element_type=jnp.float32)
    o_ref[...] = (acc + b_ref[...]).astype(o_ref.dtype)


def _round_up(x, m):
    return (x + m - 1) // m * m


def _round_down(x, m):
    return (x // m) * m


def _choose_row_tile(M, max_tile):
    """Multiple-of-8 row tile <= max_tile.

    Keeps the grid at >= 4 steps when M allows (v7x megacore + pipelining),
    prefers an exact divisor of M (no padding), and never returns tm == M for
    large M — the caller pads M up to a multiple of the returned tile instead.
    """
    max_tile = max(8, _round_down(max_tile, 8))
    if M <= 32:
        return min(max_tile, _round_up(M, 8))
    cap = max(8, _round_down(pl.cdiv(M, 4), 8))      # guarantee >= 4 grid steps
    want = max(8, min(max_tile, cap))
    for t in range(want, 7, -8):                      # prefer an exact divisor of M
        if M % t == 0:
            return t
    return want                                       # no divisor: pad M up to `want`


def paligemma_multimodal_projector(image_features, weight, bias, *, out_dtype=None):
    """image_features: [B, T, H]; weight: [P, H] (nn.Linear); bias: [P] -> [B, T, P]."""
    B, T, H = image_features.shape
    P = weight.shape[0]
    M = B * T
    out_dtype = jnp.dtype(out_dtype) if out_dtype is not None else image_features.dtype

    x2d = image_features.reshape(M, H)
    # One-time transpose + cast to the MXU-native [H, P] bf16 layout (single
    # XLA pass over the weight, once per call).  Production models should
    # store the weight pre-transposed / pre-cast and skip this.
    w_t = weight.T.astype(jnp.bfloat16)               # [H, P]
    b2d = bias.astype(jnp.float32).reshape(1, P)

    # --- Row-tile selection (VMEM-aware, megacore-aware). --------------------
    x_item = jnp.dtype(image_features.dtype).itemsize
    o_item = jnp.dtype(out_dtype).itemsize
    w_resident = 2 * H * P * 2                        # worst case: double-buffered bf16 weight
    per_row = 2 * (H * x_item + P * o_item)           # double-buffered x + out tiles
    vmem_cap = max(
        8, _round_down(max(_TILE_VMEM_BUDGET - w_resident - 2 * 4 * P, 0) // per_row, 8)
    )
    # TODO(synk): if the full [H, P] weight block ever overflows VMEM the
    # contraction (H) axis would also need tiling; not needed at PaliGemma
    # sizes (H=1152, P=2048 bf16 ~= 4.7 MB).
    max_tile = 512 if M >= 2048 else 256
    tm = _choose_row_tile(M, min(max_tile, vmem_cap))

    M_pad = _round_up(M, tm)
    if M_pad != M:
        x2d = jnp.pad(x2d, ((0, M_pad - M), (0, 0)))
    grid = (M_pad // tm,)

    flops = 2 * M_pad * H * P
    bytes_accessed = M_pad * H * x_item + H * P * 2 + P * 4 + M_pad * P * o_item

    def run(single_buffer_consts):
        const_kwargs = (
            dict(pipeline_mode=pl.Buffered(1)) if single_buffer_consts else {}
        )
        return pl.pallas_call(
            _projector_kernel,
            out_shape=jax.ShapeDtypeStruct((M_pad, P), out_dtype),
            grid_spec=pltpu.PrefetchScalarGridSpec(
                num_scalar_prefetch=0,
                grid=grid,
                in_specs=[
                    pl.BlockSpec((tm, H), lambda i: (i, 0)),
                    # Grid-invariant block indices -> weight & bias are DMA'd
                    # once and stay VMEM-resident across all row tiles.
                    pl.BlockSpec((H, P), lambda i: (0, 0), **const_kwargs),
                    pl.BlockSpec((1, P), lambda i: (0, 0), **const_kwargs),
                ],
                out_specs=pl.BlockSpec((tm, P), lambda i: (i, 0)),
            ),
            compiler_params=pltpu.CompilerParams(
                dimension_semantics=("parallel",),
                vmem_limit_bytes=_VMEM_LIMIT_BYTES,
            ),
            cost_estimate=pl.CostEstimate(
                flops=flops, transcendentals=0, bytes_accessed=bytes_accessed
            ),
        )(x2d, w_t, b2d)

    try:
        out2d = run(single_buffer_consts=True)
    except Exception:
        # pipeline_mode=pl.Buffered(1) not supported on this jax version /
        # backend: fall back to default buffering (the grid-invariant
        # index_map still means the weight is only fetched once).
        out2d = run(single_buffer_consts=False)

    if M_pad != M:
        out2d = out2d[:M]
    return out2d.reshape(B, T, P)


if __name__ == "__main__":
    # Small synthetic config consistent with the module:
    #   vision hidden_size = 32, projection_dim = 64,
    #   batch = 2, num_image_tokens = 8
    B, T, H, P = 2, 8, 32, 64

    key = jax.random.PRNGKey(0)
    kx, kw, kb = jax.random.split(key, 3)
    image_features = jax.random.normal(kx, (B, T, H), dtype=jnp.float32)
    # Deterministic synthetic parameters (not a checkpoint load).
    weight = jax.random.normal(kw, (P, H), dtype=jnp.float32) * 0.02
    bias = jax.random.normal(kb, (P,), dtype=jnp.float32) * 0.01

    out = paligemma_multimodal_projector(image_features, weight, bias)
    out = jax.block_until_ready(out)

    # Reference (plain JAX f32, same math as nn.Linear).  Matmul operands are
    # bf16 in the kernel (f32 accumulation), so tolerance is bf16-level.
    ref = image_features @ weight.T + bias
    assert out.shape == (B, T, P)
    assert out.dtype == image_features.dtype
    assert jnp.allclose(out, ref, atol=1e-2, rtol=1e-2), float(
        jnp.max(jnp.abs(out - ref))
    )

    # bf16-in / bf16-out path (how it runs inside a bf16 PaliGemma stack).
    out_bf16 = paligemma_multimodal_projector(
        image_features.astype(jnp.bfloat16), weight, bias, out_dtype=jnp.bfloat16
    )
    out_bf16 = jax.block_until_ready(out_bf16)
    assert out_bf16.dtype == jnp.bfloat16
    assert jnp.allclose(out_bf16.astype(jnp.float32), ref, atol=5e-2, rtol=5e-2)

    print("KERNEL_OK")
</pallas_src>

<mosaic_0001>
module attributes {stable_mosaic.version = 11 : i64} {
  func.func @_projector_kernel(%arg0: i32, %arg1: memref<16x32xf32, #tpu.memory_space<vmem>>, %arg2: memref<32x64xbf16, #tpu.memory_space<vmem>>, %arg3: memref<1x64xf32, #tpu.memory_space<vmem>>, %arg4: memref<16x64xf32, #tpu.memory_space<vmem>>) attributes {dimension_semantics = [#tpu.dimension_semantics<parallel>], iteration_bounds = array<i64: 1>, scalar_prefetch = 0 : i64, scratch_operands = 0 : i64, tpu.core_type = #tpu.core_type<tc>, window_params = [{transform_indices = @transform_0, window_bounds = array<i64: 16, 32>}, {pipeline_mode = #tpu.pipeline_mode<synchronous>, transform_indices = @transform_1, window_bounds = array<i64: 32, 64>}, {pipeline_mode = #tpu.pipeline_mode<synchronous>, transform_indices = @transform_2, window_bounds = array<i64: 1, 64>}, {transform_indices = @transform_3, window_bounds = array<i64: 16, 64>}]} {
    %c0 = arith.constant 0 : index
    %c0_0 = arith.constant 0 : index
    %0 = vector.load %arg1[%c0, %c0_0] : memref<16x32xf32, #tpu.memory_space<vmem>>, vector<16x32xf32>
    %1 = arith.truncf %0 : vector<16x32xf32> to vector<16x32xbf16>
    %c0_1 = arith.constant 0 : index
    %c0_2 = arith.constant 0 : index
    %2 = vector.load %arg2[%c0_1, %c0_2] : memref<32x64xbf16, #tpu.memory_space<vmem>>, vector<32x64xbf16>
    %cst = arith.constant dense<0.000000e+00> : vector<16x64xf32>
    %3 = tpu.matmul %1, %2, %cst {dimension_numbers = #tpu.dot_dimension_numbers<[1], [0], [0], [1], [0, 0, 1, 1], [], []>} : vector<16x32xbf16>, vector<32x64xbf16>, vector<16x64xf32> -> vector<16x64xf32>
    %c0_3 = arith.constant 0 : index
    %c0_4 = arith.constant 0 : index
    %4 = vector.load %arg3[%c0_3, %c0_4] : memref<1x64xf32, #tpu.memory_space<vmem>>, vector<1x64xf32>
    %5 = vector.broadcast %4 : vector<1x64xf32> to vector<16x64xf32>
    %6 = arith.addf %3, %5 : vector<16x64xf32>
    %c0_5 = arith.constant 0 : index
    %c0_6 = arith.constant 0 : index
    %7 = vector.load %arg4[%c0_5, %c0_6] : memref<16x64xf32, #tpu.memory_space<vmem>>, vector<16x64xf32>
    tpu.vector_store %arg4[%c0_5, %c0_6], %6 {strides = array<i32>} : memref<16x64xf32, #tpu.memory_space<vmem>>, vector<16x64xf32>,
    return
  }
  func.func @transform_0(%arg0: i32) -> (i32, i32) {
    %c0_i32 = arith.constant 0 : i32
    %c0_i32_0 = arith.constant 0 : i32
    return %arg0, %c0_i32 : i32, i32
  }
  func.func @transform_1(%arg0: i32) -> (i32, i32) {
    %c0_i32 = arith.constant 0 : i32
    %c0_i32_0 = arith.constant 0 : i32
    %c0_i32_1 = arith.constant 0 : i32
    return %c0_i32, %c0_i32_0 : i32, i32
  }
  func.func @transform_2(%arg0: i32) -> (i32, i32) {
    %c0_i32 = arith.constant 0 : i32
    %c0_i32_0 = arith.constant 0 : i32
    %c0_i32_1 = arith.constant 0 : i32
    return %c0_i32, %c0_i32_0 : i32, i32
  }
  func.func @transform_3(%arg0: i32) -> (i32, i32) {
    %c0_i32 = arith.constant 0 : i32
    %c0_i32_0 = arith.constant 0 : i32
    return %arg0, %c0_i32 : i32, i32
  }
}

module attributes {stable_mosaic.version = 11 : i64} {
  func.func @_projector_kernel(%arg0: i32, %arg1: memref<16x32xf32, #tpu.memory_space<vmem>>, %arg2: memref<32x64xbf16, #tpu.memory_space<vmem>>, %arg3: memref<1x64xf32, #tpu.memory_space<vmem>>, %arg4: memref<16x64xf32, #tpu.memory_space<vmem>>) attributes {dimension_semantics = [#tpu.dimension_semantics<parallel>], iteration_bounds = array<i64: 1>, scalar_prefetch = 0 : i64, scratch_operands = 0 : i64, tpu.core_type = #tpu.core_type<tc>, window_params = [{transform_indices = @transform_0, window_bounds = array<i64: 16, 32>}, {pipeline_mode = #tpu.pipeline_mode<synchronous>, transform_indices = @transform_1, window_bounds = array<i64: 32, 64>}, {pipeline_mode = #tpu.pipeline_mode<synchronous>, transform_indices = @transform_2, window_bounds = array<i64: 1, 64>}, {transform_indices = @transform_3, window_bounds = array<i64: 16, 64>}]} {
    %c0 = arith.constant 0 : index
    %c0_0 = arith.constant 0 : index
    %0 = vector.load %arg1[%c0, %c0_0] : memref<16x32xf32, #tpu.memory_space<vmem>>, vector<16x32xf32>
    %1 = arith.truncf %0 : vector<16x32xf32> to vector<16x32xbf16>
    %c0_1 = arith.constant 0 : index
    %c0_2 = arith.constant 0 : index
    %2 = vector.load %arg2[%c0_1, %c0_2] : memref<32x64xbf16, #tpu.memory_space<vmem>>, vector<32x64xbf16>
    %cst = arith.constant dense<0.000000e+00> : vector<16x64xf32>
    %3 = tpu.matmul %1, %2, %cst {dimension_numbers = #tpu.dot_dimension_numbers<[1], [0], [0], [1], [0, 0, 1, 1], [], []>} : vector<16x32xbf16>, vector<32x64xbf16>, vector<16x64xf32> -> vector<16x64xf32>
    %c0_3 = arith.constant 0 : index
    %c0_4 = arith.constant 0 : index
    %4 = vector.load %arg3[%c0_3, %c0_4] : memref<1x64xf32, #tpu.memory_space<vmem>>, vector<1x64xf32>
    %5 = vector.broadcast %4 : vector<1x64xf32> to vector<16x64xf32>
    %6 = arith.addf %3, %5 : vector<16x64xf32>
    %c0_5 = arith.constant 0 : index
    %c0_6 = arith.constant 0 : index
    %7 = vector.load %arg4[%c0_5, %c0_6] : memref<16x64xf32, #tpu.memory_space<vmem>>, vector<16x64xf32>
    tpu.vector_store %arg4[%c0_5, %c0_6], %6 {strides = array<i32>} : memref<16x64xf32, #tpu.memory_space<vmem>>, vector<16x64xf32>,
    return
  }
  func.func @transform_0(%arg0: i32) -> (i32, i32) {
    %c0_i32 = arith.constant 0 : i32
    %c0_i32_0 = arith.constant 0 : i32
    return %arg0, %c0_i32 : i32, i32
  }
  func.func @transform_1(%arg0: i32) -> (i32, i32) {
    %c0_i32 = arith.constant 0 : i32
    %c0_i32_0 = arith.constant 0 : i32
    %c0_i32_1 = arith.constant 0 : i32
    return %c0_i32, %c0_i32_0 : i32, i32
  }
  func.func @transform_2(%arg0: i32) -> (i32, i32) {
    %c0_i32 = arith.constant 0 : i32
    %c0_i32_0 = arith.constant 0 : i32
    %c0_i32_1 = arith.constant 0 : i32
    return %c0_i32, %c0_i32_0 : i32, i32
  }
  func.func @transform_3(%arg0: i32) -> (i32, i32) {
    %c0_i32 = arith.constant 0 : i32
    %c0_i32_0 = arith.constant 0 : i32
    return %arg0, %c0_i32 : i32, i32
  }
}

</mosaic_0001>

<bundles_post_ra>
// kernel: tpu_custom_call.1
= control target key start
LH: loop header
LB: loop body
LE: loop exit
PB: predicated region body
PF: predicated region fallthrough
CT: control target
= control target key end

     0   :  { %8 = vsyncpa [#allocation3], 0  ;;  %s308_s0 = inlined_call_operand.hbm [shape: f32[16,32], index: 0, kind: input, shape index: {}]   ;;  %s309_s1 = inlined_call_operand.hbm [shape: bf16[32,64], index: 1, kind: input, shape index: {}]   ;;  %s310_s2 = inlined_call_operand.vmem [shape: f32[1,64], index: 2, kind: input, shape index: {}]   ;;  %s311_s3 = inlined_call_operand.hbm [shape: f32[16,64], index: 3, kind: output, shape index: {}]  }
   0x1   :  { %9 = vsyncpa [#allocation6], 0 }
   0x2   :  { %10 = vsyncpa [#allocation4], 0  ;;  %s234_s12 = smov [#allocation2]   ;;  %s162_s16 = scalar_lea.hbm %s308_s0, 256 }
   0x3   :  { %s16_s13 = sshll.u32 %s234_s12, 4  ;;  %p163_p0 = scmp.ne.s32.totalorder %s308_s0, %s162_s16  ;;  %s17_s13 = int_to_ptr.vmem [resolvable:$true] %s16_s13 }
   0x4   :  { %p166_p1 = scmp.lt.u32.totalorder %s162_s16, %s308_s0 }
   0x6   :  { %p168_p2 = pnand %p166_p1, %p163_p0 }
   0x8   :  { %171 = shalt.err (!%p168_p2)
}
   0x9   :  { %s172_s21 = scalar_lea.vmem %s17_s13, 256  ;;  %p177_p4 = scmp.lt.s32.totalorder %s17_s13, %s17_s13 }
   0xa   :  { %p173_p3 = scmp.ne.s32.totalorder %s17_s13, %s172_s21  ;;  %p178_p5 = scmp.lt.s32.totalorder %s172_s21, %s172_s21 }
   0xc   :  { %p179_p6 = por %p178_p5, %p177_p4 }
   0xe   :  { %p180_p7 = pnand %p179_p6, %p173_p3 }
  0x10   :  { %183 = shalt.err (!%p180_p7)
}
  0x11   :  { %s235_s22 = smov 128   ;;  %s236_s23 = smov 8  }
  0x12   :  { %22 = dma.hbm_to_vmem [thread:$0]  %s308_s0, 256, %s17_s13, [#allocation3], %s235_s22, %s235_s22, %s236_s23  }
  0x13   :  { %s237_s26 = smov [#allocation5]   ;;  %s184_s30 = scalar_lea.hbm %s309_s1, 256 }
  0x14   :  { %s28_s27 = sshll.u32 %s237_s26, 4  ;;  %p185_p8 = scmp.ne.s32.totalorder %s309_s1, %s184_s30  ;;  %s29_s27 = int_to_ptr.vmem [resolvable:$true] %s28_s27 }
  0x15   :  { %p188_p9 = scmp.lt.u32.totalorder %s184_s30, %s309_s1 }
  0x17   :  { %p190_p10 = pnand %p188_p9, %p185_p8 }
  0x19   :  { %193 = shalt.err (!%p190_p10)
}
  0x1a   :  { %s194_s8 = scalar_lea.vmem %s29_s27, 256  ;;  %p199_p12 = scmp.lt.s32.totalorder %s29_s27, %s29_s27 }
  0x1b   :  { %p195_p11 = scmp.ne.s32.totalorder %s29_s27, %s194_s8  ;;  %p200_p13 = scmp.lt.s32.totalorder %s194_s8, %s194_s8 }
  0x1d   :  { %p201_p0 = por %p200_p13, %p199_p12 }
  0x1f   :  { %p202_p1 = pnand %p201_p0, %p195_p11 }
  0x21   :  { %205 = shalt.err (!%p202_p1)
}
  0x22   :  { %s238_s0 = smov 64   ;;  %s239_s9 = smov 4  }
  0x23   :  { %34 = dma.hbm_to_vmem [thread:$0]  %s309_s1, 256, %s29_s27, [#allocation6], %s238_s0, %s238_s0, %s239_s9  }
  0x24   :  { %228 = dma.done.wait [#allocation3], 256  }
  0x25   :  { %229 = vsyncadd [#allocation3], 4294967040 }
  0x26   :  { %230 = dma.done.wait [#allocation6], 256  }
  0x27   :  { %231 = vsyncadd [#allocation6], 4294967040  ;;  %v240_v0 = vmov 0.0   ;;  %vm241_vm0 = vmmov 0   ;;  %v160_v1 = vld [vmem:[#allocation5] sm:$0xff]   ;;  %v161_v2 = vld [vmem:[#allocation5 + $0x8] sm:$0xff]  }
  0x28   :  { %143 = vmatprep.subr.bf16.mxu0 %v240_v0  ;;  %147 = vmatprep.mubr.msk.bf16.mxu0 %vm241_vm0, %v240_v0  ;;  %v44_v3 = vld [vmem:[#allocation2] sm:$0xff]  ;;  %v45_v4 = vld [vmem:[#allocation2 + $0x8] sm:$0xff]  ;;  %vm70_vm1 = vcmask 261120   ;;  %vm115_vm2 = vcmask 523264   ;;  %s242_s13 = smov [#allocation7]  }
  0x29   :  { %144 = vmatpush3.bf16.msra.mxu0 %v160_v1  ;;  %v46_v5 = vpack.c.bf16 %v45_v4, %v44_v3  ;;  %v136_v6 = vld [vmem:[%s310_s2] ss:$0 sm:$0xff]  ;;  %s123_s14 = sshll.u32 %s242_s13, 4  ;;  %s124_s14 = int_to_ptr.vmem [resolvable:$true] %s123_s14 }
  0x2a   :  { %145 = vmatprep.subr.bf16.mxu0 %v240_v0  ;;  %s206_s15 = scalar_lea.vmem %s124_s14, 256  ;;  %p211_p3 = scmp.lt.s32.totalorder %s124_s14, %s124_s14 }
  0x2b   :  { %p207_p2 = scmp.ne.s32.totalorder %s124_s14, %s206_s15  ;;  %p212_p4 = scmp.lt.s32.totalorder %s206_s15, %s206_s15 }
  0x2d   :  { %146 = vmatpush3.bf16.msra.mxu0 %v161_v2  ;;  %p213_p5 = por %p212_p4, %p211_p3 }
  0x2f   :  { %p214_p6 = pnand %p213_p5, %p207_p2 }
  0x30   :  { %148 = vmatmul.mubr.msk.bf16.vlgmr.msra.gmra.mrb[0].mxu0 %vm70_vm1, %v46_v5 }
 0x103   :  { %v108_v7 = vpop.f32.mrb[0].mxu0 }
 0x104   :  { %v109_v8 = vadd.f32 %v136_v6, %v108_v7  ;;  %v149_v9 = vpop.f32.mrb[1].mxu0 }
 0x105   :  { %v111_v10 = vpop.f32.mrb[2].mxu0 }
 0x106   :  { %v112_v11 = vadd.f32 %v136_v6, %v111_v10  ;;  %v150_v12 = vpop.f32.mrb[3].mxu0  ;;  %116 = vst.msk [vmem:[#allocation7] sm:$0xff] %vm115_vm2, %v109_v8 }
 0x108   :  { %117 = vst.msk [vmem:[#allocation7 + $0x8] sm:$0xff] %vm115_vm2, %v112_v11 }
 0x109   :  { %217 = shalt.err (!%p214_p6)
}
 0x10a   :  { %s218_s17 = scalar_lea.hbm %s311_s3, 256 }
 0x10b   :  { %p219_p7 = scmp.ne.s32.totalorder %s311_s3, %s218_s17  ;;  %p222_p8 = scmp.lt.u32.totalorder %s218_s17, %s311_s3 }
 0x10d   :  { %p224_p9 = pnand %p222_p8, %p219_p7 }
 0x10f   :  { %227 = shalt.err (!%p224_p9)
}
 0x110   :  { %129 = dma.vmem_to_hbm [thread:$0]  %s124_s14, 256, %s311_s3, [#allocation4], %s235_s22, %s235_s22, %s236_s23  }
 0x111   :  { %232 = dma.done.wait [#allocation4], 256  }
 0x112   :  { %233 = vsyncadd [#allocation4], 4294967040 }
 0x113   :  { %133 = vsyncpa [#allocation3], 1 }
 0x114   :  { %134 = vsyncpa [#allocation6], 1 }
 0x115   :  { %135 = vsyncpa [#allocation4], 1 }

// kernel: tpu_custom_call.1
= control target key start
LH: loop header
LB: loop body
LE: loop exit
PB: predicated region body
PF: predicated region fallthrough
CT: control target
= control target key end

     0   :  { %8 = vsyncpa [#allocation3], 0  ;;  %s308_s0 = inlined_call_operand.hbm [shape: f32[16,32], index: 0, kind: input, shape index: {}]   ;;  %s309_s1 = inlined_call_operand.hbm [shape: bf16[32,64], index: 1, kind: input, shape index: {}]   ;;  %s310_s2 = inlined_call_operand.vmem [shape: f32[1,64], index: 2, kind: input, shape index: {}]   ;;  %s311_s3 = inlined_call_operand.hbm [shape: f32[16,64], index: 3, kind: output, shape index: {}]  }
   0x1   :  { %9 = vsyncpa [#allocation6], 0 }
   0x2   :  { %10 = vsyncpa [#allocation4], 0  ;;  %s234_s12 = smov [#allocation2]   ;;  %s162_s16 = scalar_lea.hbm %s308_s0, 256 }
   0x3   :  { %s16_s13 = sshll.u32 %s234_s12, 4  ;;  %p163_p0 = scmp.ne.s32.totalorder %s308_s0, %s162_s16  ;;  %s17_s13 = int_to_ptr.vmem [resolvable:$true] %s16_s13 }
   0x4   :  { %p166_p1 = scmp.lt.u32.totalorder %s162_s16, %s308_s0 }
   0x6   :  { %p168_p2 = pnand %p166_p1, %p163_p0 }
   0x8   :  { %171 = shalt.err (!%p168_p2)
}
   0x9   :  { %s172_s21 = scalar_lea.vmem %s17_s13, 256  ;;  %p177_p4 = scmp.lt.s32.totalorder %s17_s13, %s17_s13 }
   0xa   :  { %p173_p3 = scmp.ne.s32.totalorder %s17_s13, %s172_s21  ;;  %p178_p5 = scmp.lt.s32.totalorder %s172_s21, %s172_s21 }
   0xc   :  { %p179_p6 = por %p178_p5, %p177_p4 }
   0xe   :  { %p180_p7 = pnand %p179_p6, %p173_p3 }
  0x10   :  { %183 = shalt.err (!%p180_p7)
}
  0x11   :  { %s235_s22 = smov 128   ;;  %s236_s23 = smov 8  }
  0x12   :  { %22 = dma.hbm_to_vmem [thread:$0]  %s308_s0, 256, %s17_s13, [#allocation3], %s235_s22, %s235_s22, %s236_s23  }
  0x13   :  { %s237_s26 = smov [#allocation5]   ;;  %s184_s30 = scalar_lea.hbm %s309_s1, 256 }
  0x14   :  { %s28_s27 = sshll.u32 %s237_s26, 4  ;;  %p185_p8 = scmp.ne.s32.totalorder %s309_s1, %s184_s30  ;;  %s29_s27 = int_to_ptr.vmem [resolvable:$true] %s28_s27 }
  0x15   :  { %p188_p9 = scmp.lt.u32.totalorder %s184_s30, %s309_s1 }
  0x17   :  { %p190_p10 = pnand %p188_p9, %p185_p8 }
  0x19   :  { %193 = shalt.err (!%p190_p10)
}
  0x1a   :  { %s194_s8 = scalar_lea.vmem %s29_s27, 256  ;;  %p199_p12 = scmp.lt.s32.totalorder %s29_s27, %s29_s27 }
  0x1b   :  { %p195_p11 = scmp.ne.s32.totalorder %s29_s27, %s194_s8  ;;  %p200_p13 = scmp.lt.s32.totalorder %s194_s8, %s194_s8 }
  0x1d   :  { %p201_p0 = por %p200_p13, %p199_p12 }
  0x1f   :  { %p202_p1 = pnand %p201_p0, %p195_p11 }
  0x21   :  { %205 = shalt.err (!%p202_p1)
}
  0x22   :  { %s238_s0 = smov 64   ;;  %s239_s9 = smov 4  }
  0x23   :  { %34 = dma.hbm_to_vmem [thread:$0]  %s309_s1, 256, %s29_s27, [#allocation6], %s238_s0, %s238_s0, %s239_s9  }
  0x24   :  { %228 = dma.done.wait [#allocation3], 256  }
  0x25   :  { %229 = vsyncadd [#allocation3], 4294967040 }
  0x26   :  { %230 = dma.done.wait [#allocation6], 256  }
  0x27   :  { %231 = vsyncadd [#allocation6], 4294967040  ;;  %v240_v0 = vmov 0.0   ;;  %vm241_vm0 = vmmov 0   ;;  %v160_v1 = vld [vmem:[#allocation5] sm:$0xff]   ;;  %v161_v2 = vld [vmem:[#allocation5 + $0x8] sm:$0xff]  }
  0x28   :  { %143 = vmatprep.subr.bf16.mxu0 %v240_v0  ;;  %147 = vmatprep.mubr.msk.bf16.mxu0 %vm241_vm0, %v240_v0  ;;  %v44_v3 = vld [vmem:[#allocation2] sm:$0xff]  ;;  %v45_v4 = vld [vmem:[#allocation2 + $0x8] sm:$0xff]  ;;  %vm70_vm1 = vcmask 261120   ;;  %vm115_vm2 = vcmask 523264   ;;  %s242_s13 = smov [#allocation7]  }
  0x29   :  { %144 = vmatpush3.bf16.msra.mxu0 %v160_v1  ;;  %v46_v5 = vpack.c.bf16 %v45_v4, %v44_v3  ;;  %v136_v6 = vld [vmem:[%s310_s2] ss:$0 sm:$0xff]  ;;  %s123_s14 = sshll.u32 %s242_s13, 4  ;;  %s124_s14 = int_to_ptr.vmem [resolvable:$true] %s123_s14 }
  0x2a   :  { %145 = vmatprep.subr.bf16.mxu0 %v240_v0  ;;  %s206_s15 = scalar_lea.vmem %s124_s14, 256  ;;  %p211_p3 = scmp.lt.s32.totalorder %s124_s14, %s124_s14 }
  0x2b   :  { %p207_p2 = scmp.ne.s32.totalorder %s124_s14, %s206_s15  ;;  %p212_p4 = scmp.lt.s32.totalorder %s206_s15, %s206_s15 }
  0x2d   :  { %146 = vmatpush3.bf16.msra.mxu0 %v161_v2  ;;  %p213_p5 = por %p212_p4, %p211_p3 }
  0x2f   :  { %p214_p6 = pnand %p213_p5, %p207_p2 }
  0x30   :  { %148 = vmatmul.mubr.msk.bf16.vlgmr.msra.gmra.mrb[0].mxu0 %vm70_vm1, %v46_v5 }
 0x103   :  { %v108_v7 = vpop.f32.mrb[0].mxu0 }
 0x104   :  { %v109_v8 = vadd.f32 %v136_v6, %v108_v7  ;;  %v149_v9 = vpop.f32.mrb[1].mxu0 }
 0x105   :  { %v111_v10 = vpop.f32.mrb[2].mxu0 }
 0x106   :  { %v112_v11 = vadd.f32 %v136_v6, %v111_v10  ;;  %v150_v12 = vpop.f32.mrb[3].mxu0  ;;  %116 = vst.msk [vmem:[#allocation7] sm:$0xff] %vm115_vm2, %v109_v8 }
 0x108   :  { %117 = vst.msk [vmem:[#allocation7 + $0x8] sm:$0xff] %vm115_vm2, %v112_v11 }
 0x109   :  { %217 = shalt.err (!%p214_p6)
}
 0x10a   :  { %s218_s17 = scalar_lea.hbm %s311_s3, 256 }
 0x10b   :  { %p219_p7 = scmp.ne.s32.totalorder %s311_s3, %s218_s17  ;;  %p222_p8 = scmp.lt.u32.totalorder %s218_s17, %s311_s3 }
 0x10d   :  { %p224_p9 = pnand %p222_p8, %p219_p7 }
 0x10f   :  { %227 = shalt.err (!%p224_p9)
}
 0x110   :  { %129 = dma.vmem_to_hbm [thread:$0]  %s124_s14, 256, %s311_s3, [#allocation4], %s235_s22, %s235_s22, %s236_s23  }
 0x111   :  { %232 = dma.done.wait [#allocation4], 256  }
 0x112   :  { %233 = vsyncadd [#allocation4], 4294967040 }
 0x113   :  { %133 = vsyncpa [#allocation3], 1 }
 0x114   :  { %134 = vsyncpa [#allocation6], 1 }
 0x115   :  { %135 = vsyncpa [#allocation4], 1 }

</bundles_post_ra>
